<compile_context>
chip_gen: v6e
topology: v6e:2x2x1
jax: 0.10.0
libtpu: 0.0.40
codegen_flags: <defaults>
</compile_context>

<pallas_src>
import jax
import jax.numpy as jnp
from jax.experimental import pallas as pl
from jax.experimental.pallas import tpu as pltpu

LANE = 128


def _round_up(n, m):
    return ((n + m - 1) // m) * m


def _vmem_budget_bytes():
    """Generation-aware scoped-VMEM budget (capacity minus headroom)."""
    cap = None
    try:
        cap = getattr(pltpu.get_tpu_info(), "vmem_capacity_bytes", None)
    except Exception:
        cap = None
    if not cap:
        cap = 64 * 1024 * 1024          # v7x per-TC size: safe everywhere
    return int(cap) * 3 // 4            # headroom for compiler-internal scratch


def _make_kernel(split_z, z_dim, k_tiled):
    """Kernel bodies: fused MLP encoder, optionally K-tiled over D_in."""

    def _epilogue(h_acc, b1, w2_ref, b2, out_refs):
        h = jnp.maximum(h_acc + b1, 0.0)                        # ReLU in f32
        y = jnp.dot(h.astype(w2_ref.dtype), w2_ref[...],
                    preferred_element_type=jnp.float32) + b2    # (tb, Zp) f32
        if split_z:
            mu_ref, var_ref = out_refs
            mu_ref[...] = y[:, :z_dim].astype(mu_ref.dtype)
            var_ref[...] = y[:, z_dim:2 * z_dim].astype(var_ref.dtype)
        else:
            out_refs[0][...] = y.astype(out_refs[0].dtype)

    if not k_tiled:
        def kernel(x_ref, w1_ref, b1_ref, w2_ref, b2_ref, *out_refs):
            h_acc = jnp.dot(x_ref[...], w1_ref[...],
                            preferred_element_type=jnp.float32)
            _epilogue(h_acc, b1_ref[...], w2_ref, b2_ref[...], out_refs)
    else:
        def kernel(x_ref, w1_ref, b1_ref, w2_ref, b2_ref, *rest):
            *out_refs, acc_ref = rest
            k = pl.program_id(1)

            @pl.when(k == 0)
            def _():
                acc_ref[...] = jnp.zeros_like(acc_ref)

            acc_ref[...] += jnp.dot(x_ref[...], w1_ref[...],
                                    preferred_element_type=jnp.float32)

            @pl.when(k == pl.num_programs(1) - 1)
            def _():
                _epilogue(acc_ref[...], b1_ref[...], w2_ref, b2_ref[...],
                          out_refs)

    return kernel


def pack_encoder_params(params, compute_dtype=jnp.float32):
    """One-time packing: lane-pad weights and fuse the [mu | var] projection.

    params layout (torch Linear weight is [out, in]; stored here as [in, out]):
      w1:  [D_in, H]   b1:  [1, H]
      wmu: [H, Z]      bmu: [1, Z]
      wvar:[H, Z]      bvar:[1, Z]
    Call once at init; the packed dict is reused by every forward call.
    """
    cd = jnp.dtype(compute_dtype)
    D_in, H = params["w1"].shape
    Z = params["wmu"].shape[1]
    Hp = _round_up(H, LANE)
    Zp = _round_up(2 * Z, LANE)              # fused [mu | var] output width

    w1 = jnp.zeros((D_in, Hp), cd).at[:, :H].set(params["w1"].astype(cd))
    b1 = jnp.zeros((1, Hp), jnp.float32).at[:, :H].set(
        params["b1"].astype(jnp.float32))
    w2f = jnp.concatenate([params["wmu"], params["wvar"]], axis=1)   # [H, 2Z]
    b2f = jnp.concatenate([params["bmu"], params["bvar"]], axis=1)   # [1, 2Z]
    w2 = jnp.zeros((Hp, Zp), cd).at[:H, :2 * Z].set(w2f.astype(cd))
    b2 = jnp.zeros((1, Zp), jnp.float32).at[:, :2 * Z].set(
        b2f.astype(jnp.float32))
    # Zero-padded hidden columns (zero w1 cols + zero b1 -> relu(0)=0) and zero
    # w2 rows contribute nothing: numerics match the unpadded model.

    return dict(w1=w1, b1=b1, w2=w2, b2=b2,
                D_in=D_in, H=H, Z=Z, Hp=Hp, Zp=Zp, compute_dtype=cd)


def encoder_forward(x, packed, *, batch_tile=None, k_tile=None):
    """x: [B, D_in]. packed: output of pack_encoder_params.

    Returns (z_mu, z_var), each [B, Z] float32 (matching torch's x.float()).
    """
    cd = packed["compute_dtype"]
    D_in, Z = packed["D_in"], packed["Z"]
    Hp, Zp = packed["Hp"], packed["Zp"]
    B = x.shape[0]
    assert x.shape[1] == D_in, "input feature dim mismatch"

    ci = cd.itemsize
    sub = 16 if ci == 2 else 8               # sublane multiple per dtype

    # ---- Batch tiling: big default tile (HBM roofline), sublane-rounded,
    # ---- padded tail, and >=2 grid steps when possible (v7x 2-TC sharding).
    if batch_tile is None:
        tb = min(512, _round_up(B, sub))
    else:
        tb = max(sub, _round_up(int(batch_tile), sub))
    Bp = _round_up(B, tb)
    if Bp // tb == 1 and B > sub:
        tb = max(sub, _round_up((B + 1) // 2, sub))
        Bp = _round_up(B, tb)

    budget = _vmem_budget_bytes()

    def est(tb_, tk_):
        """Resident + streamed VMEM footprint (weights single-buffered)."""
        bias = 8 * Hp * 4 + 8 * Zp * 4
        w2b = Hp * Zp * ci
        outb = 2 * tb_ * Zp * 4
        if tk_ is None:
            return D_in * Hp * ci + 2 * tb_ * D_in * ci + w2b + bias + outb
        return (2 * tk_ * Hp * ci + 2 * tb_ * tk_ * ci + tb_ * Hp * 4
                + w2b + bias + outb)

    # ---- Stream w1 over D_in (K axis) when it cannot stay resident
    # ---- (primarily protects v7x's 64 MiB VMEM).
    if k_tile is None and est(tb, None) > budget:
        k_tile = 512
        while k_tile > LANE and est(tb, k_tile) > budget:
            k_tile //= 2
    if k_tile is not None:
        k_tile = min(_round_up(int(k_tile), LANE), _round_up(D_in, LANE))
    while est(tb, k_tile) > budget and tb > sub:
        tb = max(sub, _round_up(tb // 2, sub))
        Bp = _round_up(B, tb)

    # ---- Pad activations (and w1 rows, K-tiled path only) to tile multiples.
    xp = x.astype(cd)
    Dp = D_in if k_tile is None else _round_up(D_in, k_tile)
    if Bp != B or Dp != D_in:
        xp = jnp.pad(xp, ((0, Bp - B), (0, Dp - D_in)))
    w1 = packed["w1"]
    if Dp != D_in:
        # Only in the (rare) K-tiled path; zero rows contribute nothing.
        w1 = jnp.pad(w1, ((0, Dp - D_in), (0, 0)))

    split_z = (Z % LANE == 0)                # two lane-dense outputs, no slices
    vmem_limit = int(min(budget, max(16 * 1024 * 1024, 2 * est(tb, k_tile))))

    def run(single_buffer_weights):
        pm = (dict(pipeline_mode=pl.Buffered(1))
              if single_buffer_weights else {})

        if k_tile is None:
            grid = (Bp // tb,)
            dims = ("parallel",)
            x_spec = pl.BlockSpec((tb, Dp), lambda i: (i, 0))
            w1_spec = pl.BlockSpec((Dp, Hp), lambda i: (0, 0), **pm)
            b1_spec = pl.BlockSpec((1, Hp), lambda i: (0, 0), **pm)
            w2_spec = pl.BlockSpec((Hp, Zp), lambda i: (0, 0), **pm)
            b2_spec = pl.BlockSpec((1, Zp), lambda i: (0, 0), **pm)
            out_map = lambda i: (i, 0)
            scratch = []
        else:
            grid = (Bp // tb, Dp // k_tile)
            dims = ("parallel", "arbitrary")
            x_spec = pl.BlockSpec((tb, k_tile), lambda i, k: (i, k))
            w1_spec = pl.BlockSpec((k_tile, Hp), lambda i, k: (k, 0))
            b1_spec = pl.BlockSpec((1, Hp), lambda i, k: (0, 0), **pm)
            w2_spec = pl.BlockSpec((Hp, Zp), lambda i, k: (0, 0), **pm)
            b2_spec = pl.BlockSpec((1, Zp), lambda i, k: (0, 0), **pm)
            out_map = lambda i, k: (i, 0)
            scratch = [pltpu.VMEM((tb, Hp), jnp.float32)]

        if split_z:
            out_shape = (jax.ShapeDtypeStruct((Bp, Z), jnp.float32),
                         jax.ShapeDtypeStruct((Bp, Z), jnp.float32))
            out_specs = (pl.BlockSpec((tb, Z), out_map),
                         pl.BlockSpec((tb, Z), out_map))
        else:
            out_shape = jax.ShapeDtypeStruct((Bp, Zp), jnp.float32)
            out_specs = pl.BlockSpec((tb, Zp), out_map)

        kernel = _make_kernel(split_z, Z, k_tile is not None)
        return pl.pallas_call(
            kernel,
            out_shape=out_shape,
            grid_spec=pltpu.PrefetchScalarGridSpec(
                num_scalar_prefetch=0,
                grid=grid,
                in_specs=[x_spec, w1_spec, b1_spec, w2_spec, b2_spec],
                out_specs=out_specs,
                scratch_shapes=scratch),
            compiler_params=pltpu.CompilerParams(
                dimension_semantics=dims,
                vmem_limit_bytes=vmem_limit),
        )(xp, w1, packed["b1"], packed["w2"], packed["b2"])

    try:
        out = run(True)      # single-buffered resident weights (half the VMEM)
    except Exception:
        out = run(False)     # fall back to default double buffering

    if split_z:
        z_mu, z_var = out
        if Bp != B:
            z_mu, z_var = z_mu[:B], z_var[:B]
        return z_mu, z_var
    return out[:B, :Z], out[:B, Z:2 * Z]


def init_params(key, input_dim, hidden_dim, z_dim):
    """Deterministic synthetic params (PyTorch Linear shapes, stored transposed)."""
    ks = jax.random.split(key, 6)
    w1 = jax.random.normal(ks[0], (input_dim, hidden_dim), jnp.float32) * 0.1
    b1 = jax.random.normal(ks[1], (1, hidden_dim), jnp.float32) * 0.1
    wmu = jax.random.normal(ks[2], (hidden_dim, z_dim), jnp.float32) * 0.1
    bmu = jax.random.normal(ks[3], (1, z_dim), jnp.float32) * 0.1
    wvar = jax.random.normal(ks[4], (hidden_dim, z_dim), jnp.float32) * 0.1
    bvar = jax.random.normal(ks[5], (1, z_dim), jnp.float32) * 0.1
    return dict(w1=w1, b1=b1, wmu=wmu, bmu=bmu, wvar=wvar, bvar=bvar)


def encoder_ref(x, p, compute_dtype=jnp.float32):
    """Plain-JAX reference of the PyTorch forward (matching operand cast)."""
    cd = compute_dtype
    rt = lambda a: a.astype(cd).astype(jnp.float32)   # round-trip to compute dtype
    h = jnp.maximum(rt(x) @ rt(p["w1"]) + p["b1"], 0.0)
    hq = rt(h)
    return hq @ rt(p["wmu"]) + p["bmu"], hq @ rt(p["wvar"]) + p["bvar"]


if __name__ == "__main__":
    key = jax.random.PRNGKey(0)
    k_x, k_p, k_x2, k_p2 = jax.random.split(key, 4)

    # --- small MLP encoder (matches the torch module's default path) -------
    B, D_in, H, Z = 16, 16, 32, 8
    x = jax.random.normal(k_x, (B, D_in), jnp.float32)
    params = init_params(k_p, D_in, H, Z)

    # f32 operands (safe on every TPU generation, tight tolerance).
    packed_f32 = pack_encoder_params(params, jnp.float32)   # pack ONCE
    z_mu, z_var = encoder_forward(x, packed_f32)
    jax.block_until_ready((z_mu, z_var))
    r_mu, r_var = encoder_ref(x, params, jnp.float32)
    assert z_mu.shape == (B, Z) and z_var.shape == (B, Z)
    assert jnp.allclose(z_mu, r_mu, atol=1e-5, rtol=1e-5)
    assert jnp.allclose(z_var, r_var, atol=1e-5, rtol=1e-5)

    # bf16 operands with f32 accumulation (recommended on v6e/v7x).
    packed_bf16 = pack_encoder_params(params, jnp.bfloat16)
    z_mu_bf, z_var_bf = encoder_forward(x, packed_bf16)
    jax.block_until_ready((z_mu_bf, z_var_bf))
    r_mu_bf, r_var_bf = encoder_ref(x, params, jnp.bfloat16)
    assert jnp.allclose(z_mu_bf, r_mu_bf, atol=5e-2, rtol=5e-2)
    assert jnp.allclose(z_var_bf, r_var_bf, atol=5e-2, rtol=5e-2)

    # --- larger config exercising the K-tiled (streamed w1) path and the
    # --- split mu/var outputs (Z multiple of 128, no post-kernel Z slices) ---
    B2, D2, H2, Z2 = 64, 256, 256, 128
    x2 = jax.random.normal(k_x2, (B2, D2), jnp.float32)
    params2 = init_params(k_p2, D2, H2, Z2)
    packed2 = pack_encoder_params(params2, jnp.float32)
    z_mu2, z_var2 = encoder_forward(x2, packed2, k_tile=128)
    jax.block_until_ready((z_mu2, z_var2))
    r_mu2, r_var2 = encoder_ref(x2, params2, jnp.float32)
    assert z_mu2.shape == (B2, Z2) and z_var2.shape == (B2, Z2)
    assert jnp.allclose(z_mu2, r_mu2, atol=1e-4, rtol=1e-4)
    assert jnp.allclose(z_var2, r_var2, atol=1e-4, rtol=1e-4)

    print("KERNEL_OK")
</pallas_src>

<mosaic_0001>
module attributes {stable_mosaic.version = 11 : i64} {
  func.func @kernel(%arg0: i32, %arg1: memref<8x16xf32, #tpu.memory_space<vmem>>, %arg2: memref<16x128xf32, #tpu.memory_space<vmem>>, %arg3: memref<1x128xf32, #tpu.memory_space<vmem>>, %arg4: memref<128x128xf32, #tpu.memory_space<vmem>>, %arg5: memref<1x128xf32, #tpu.memory_space<vmem>>, %arg6: memref<8x128xf32, #tpu.memory_space<vmem>>) attributes {dimension_semantics = [#tpu.dimension_semantics<parallel>], iteration_bounds = array<i64: 2>, scalar_prefetch = 0 : i64, scratch_operands = 0 : i64, tpu.core_type = #tpu.core_type<tc>, window_params = [{transform_indices = @transform_0, window_bounds = array<i64: 8, 16>}, {pipeline_mode = #tpu.pipeline_mode<synchronous>, transform_indices = @transform_1, window_bounds = array<i64: 16, 128>}, {pipeline_mode = #tpu.pipeline_mode<synchronous>, transform_indices = @transform_2, window_bounds = array<i64: 1, 128>}, {pipeline_mode = #tpu.pipeline_mode<synchronous>, transform_indices = @transform_3, window_bounds = array<i64: 128, 128>}, {pipeline_mode = #tpu.pipeline_mode<synchronous>, transform_indices = @transform_4, window_bounds = array<i64: 1, 128>}, {transform_indices = @transform_5, window_bounds = array<i64: 8, 128>}]} {
    %c0 = arith.constant 0 : index
    %c0_0 = arith.constant 0 : index
    %0 = vector.load %arg1[%c0, %c0_0] : memref<8x16xf32, #tpu.memory_space<vmem>>, vector<8x16xf32>
    %c0_1 = arith.constant 0 : index
    %c0_2 = arith.constant 0 : index
    %1 = vector.load %arg2[%c0_1, %c0_2] : memref<16x128xf32, #tpu.memory_space<vmem>>, vector<16x128xf32>
    %cst = arith.constant dense<0.000000e+00> : vector<8x128xf32>
    %2 = tpu.matmul %0, %1, %cst {dimension_numbers = #tpu.dot_dimension_numbers<[1], [0], [0], [1], [0, 0, 1, 1], [], []>} : vector<8x16xf32>, vector<16x128xf32>, vector<8x128xf32> -> vector<8x128xf32>
    %c0_3 = arith.constant 0 : index
    %c0_4 = arith.constant 0 : index
    %3 = vector.load %arg3[%c0_3, %c0_4] : memref<1x128xf32, #tpu.memory_space<vmem>>, vector<1x128xf32>
    %c0_5 = arith.constant 0 : index
    %c0_6 = arith.constant 0 : index
    %4 = vector.load %arg5[%c0_5, %c0_6] : memref<1x128xf32, #tpu.memory_space<vmem>>, vector<1x128xf32>
    %5 = vector.broadcast %3 : vector<1x128xf32> to vector<8x128xf32>
    %6 = arith.addf %2, %5 : vector<8x128xf32>
    %cst_7 = arith.constant 0.000000e+00 : f32
    %7 = vector.broadcast %cst_7 : f32 to vector<8x128xf32>
    %8 = arith.maximumf %6, %7 : vector<8x128xf32>
    %c0_8 = arith.constant 0 : index
    %c0_9 = arith.constant 0 : index
    %9 = vector.load %arg4[%c0_8, %c0_9] : memref<128x128xf32, #tpu.memory_space<vmem>>, vector<128x128xf32>
    %cst_10 = arith.constant dense<0.000000e+00> : vector<8x128xf32>
    %10 = tpu.matmul %8, %9, %cst_10 {dimension_numbers = #tpu.dot_dimension_numbers<[1], [0], [0], [1], [0, 0, 1, 1], [], []>} : vector<8x128xf32>, vector<128x128xf32>, vector<8x128xf32> -> vector<8x128xf32>
    %11 = vector.broadcast %4 : vector<1x128xf32> to vector<8x128xf32>
    %12 = arith.addf %10, %11 : vector<8x128xf32>
    %c0_11 = arith.constant 0 : index
    %c0_12 = arith.constant 0 : index
    %13 = vector.load %arg6[%c0_11, %c0_12] : memref<8x128xf32, #tpu.memory_space<vmem>>, vector<8x128xf32>
    tpu.vector_store %arg6[%c0_11, %c0_12], %12 {strides = array<i32>} : memref<8x128xf32, #tpu.memory_space<vmem>>, vector<8x128xf32>,
    return
  }
  func.func @transform_0(%arg0: i32) -> (i32, i32) {
    %c0_i32 = arith.constant 0 : i32
    %c0_i32_0 = arith.constant 0 : i32
    return %arg0, %c0_i32 : i32, i32
  }
  func.func @transform_1(%arg0: i32) -> (i32, i32) {
    %c0_i32 = arith.constant 0 : i32
    %c0_i32_0 = arith.constant 0 : i32
    %c0_i32_1 = arith.constant 0 : i32
    return %c0_i32, %c0_i32_0 : i32, i32
  }
  func.func @transform_2(%arg0: i32) -> (i32, i32) {
    %c0_i32 = arith.constant 0 : i32
    %c0_i32_0 = arith.constant 0 : i32
    %c0_i32_1 = arith.constant 0 : i32
    return %c0_i32, %c0_i32_0 : i32, i32
  }
  func.func @transform_3(%arg0: i32) -> (i32, i32) {
    %c0_i32 = arith.constant 0 : i32
    %c0_i32_0 = arith.constant 0 : i32
    %c0_i32_1 = arith.constant 0 : i32
    return %c0_i32, %c0_i32_0 : i32, i32
  }
  func.func @transform_4(%arg0: i32) -> (i32, i32) {
    %c0_i32 = arith.constant 0 : i32
    %c0_i32_0 = arith.constant 0 : i32
    %c0_i32_1 = arith.constant 0 : i32
    return %c0_i32, %c0_i32_0 : i32, i32
  }
  func.func @transform_5(%arg0: i32) -> (i32, i32) {
    %c0_i32 = arith.constant 0 : i32
    %c0_i32_0 = arith.constant 0 : i32
    return %arg0, %c0_i32 : i32, i32
  }
}

module attributes {stable_mosaic.version = 11 : i64} {
  func.func @kernel(%arg0: i32, %arg1: memref<8x16xf32, #tpu.memory_space<vmem>>, %arg2: memref<16x128xf32, #tpu.memory_space<vmem>>, %arg3: memref<1x128xf32, #tpu.memory_space<vmem>>, %arg4: memref<128x128xf32, #tpu.memory_space<vmem>>, %arg5: memref<1x128xf32, #tpu.memory_space<vmem>>, %arg6: memref<8x128xf32, #tpu.memory_space<vmem>>) attributes {dimension_semantics = [#tpu.dimension_semantics<parallel>], iteration_bounds = array<i64: 2>, scalar_prefetch = 0 : i64, scratch_operands = 0 : i64, tpu.core_type = #tpu.core_type<tc>, window_params = [{transform_indices = @transform_0, window_bounds = array<i64: 8, 16>}, {pipeline_mode = #tpu.pipeline_mode<synchronous>, transform_indices = @transform_1, window_bounds = array<i64: 16, 128>}, {pipeline_mode = #tpu.pipeline_mode<synchronous>, transform_indices = @transform_2, window_bounds = array<i64: 1, 128>}, {pipeline_mode = #tpu.pipeline_mode<synchronous>, transform_indices = @transform_3, window_bounds = array<i64: 128, 128>}, {pipeline_mode = #tpu.pipeline_mode<synchronous>, transform_indices = @transform_4, window_bounds = array<i64: 1, 128>}, {transform_indices = @transform_5, window_bounds = array<i64: 8, 128>}]} {
    %c0 = arith.constant 0 : index
    %c0_0 = arith.constant 0 : index
    %0 = vector.load %arg1[%c0, %c0_0] : memref<8x16xf32, #tpu.memory_space<vmem>>, vector<8x16xf32>
    %c0_1 = arith.constant 0 : index
    %c0_2 = arith.constant 0 : index
    %1 = vector.load %arg2[%c0_1, %c0_2] : memref<16x128xf32, #tpu.memory_space<vmem>>, vector<16x128xf32>
    %cst = arith.constant dense<0.000000e+00> : vector<8x128xf32>
    %2 = tpu.matmul %0, %1, %cst {dimension_numbers = #tpu.dot_dimension_numbers<[1], [0], [0], [1], [0, 0, 1, 1], [], []>} : vector<8x16xf32>, vector<16x128xf32>, vector<8x128xf32> -> vector<8x128xf32>
    %c0_3 = arith.constant 0 : index
    %c0_4 = arith.constant 0 : index
    %3 = vector.load %arg3[%c0_3, %c0_4] : memref<1x128xf32, #tpu.memory_space<vmem>>, vector<1x128xf32>
    %c0_5 = arith.constant 0 : index
    %c0_6 = arith.constant 0 : index
    %4 = vector.load %arg5[%c0_5, %c0_6] : memref<1x128xf32, #tpu.memory_space<vmem>>, vector<1x128xf32>
    %5 = vector.broadcast %3 : vector<1x128xf32> to vector<8x128xf32>
    %6 = arith.addf %2, %5 : vector<8x128xf32>
    %cst_7 = arith.constant 0.000000e+00 : f32
    %7 = vector.broadcast %cst_7 : f32 to vector<8x128xf32>
    %8 = arith.maximumf %6, %7 : vector<8x128xf32>
    %c0_8 = arith.constant 0 : index
    %c0_9 = arith.constant 0 : index
    %9 = vector.load %arg4[%c0_8, %c0_9] : memref<128x128xf32, #tpu.memory_space<vmem>>, vector<128x128xf32>
    %cst_10 = arith.constant dense<0.000000e+00> : vector<8x128xf32>
    %10 = tpu.matmul %8, %9, %cst_10 {dimension_numbers = #tpu.dot_dimension_numbers<[1], [0], [0], [1], [0, 0, 1, 1], [], []>} : vector<8x128xf32>, vector<128x128xf32>, vector<8x128xf32> -> vector<8x128xf32>
    %11 = vector.broadcast %4 : vector<1x128xf32> to vector<8x128xf32>
    %12 = arith.addf %10, %11 : vector<8x128xf32>
    %c0_11 = arith.constant 0 : index
    %c0_12 = arith.constant 0 : index
    %13 = vector.load %arg6[%c0_11, %c0_12] : memref<8x128xf32, #tpu.memory_space<vmem>>, vector<8x128xf32>
    tpu.vector_store %arg6[%c0_11, %c0_12], %12 {strides = array<i32>} : memref<8x128xf32, #tpu.memory_space<vmem>>, vector<8x128xf32>,
    return
  }
  func.func @transform_0(%arg0: i32) -> (i32, i32) {
    %c0_i32 = arith.constant 0 : i32
    %c0_i32_0 = arith.constant 0 : i32
    return %arg0, %c0_i32 : i32, i32
  }
  func.func @transform_1(%arg0: i32) -> (i32, i32) {
    %c0_i32 = arith.constant 0 : i32
    %c0_i32_0 = arith.constant 0 : i32
    %c0_i32_1 = arith.constant 0 : i32
    return %c0_i32, %c0_i32_0 : i32, i32
  }
  func.func @transform_2(%arg0: i32) -> (i32, i32) {
    %c0_i32 = arith.constant 0 : i32
    %c0_i32_0 = arith.constant 0 : i32
    %c0_i32_1 = arith.constant 0 : i32
    return %c0_i32, %c0_i32_0 : i32, i32
  }
  func.func @transform_3(%arg0: i32) -> (i32, i32) {
    %c0_i32 = arith.constant 0 : i32
    %c0_i32_0 = arith.constant 0 : i32
    %c0_i32_1 = arith.constant 0 : i32
    return %c0_i32, %c0_i32_0 : i32, i32
  }
  func.func @transform_4(%arg0: i32) -> (i32, i32) {
    %c0_i32 = arith.constant 0 : i32
    %c0_i32_0 = arith.constant 0 : i32
    %c0_i32_1 = arith.constant 0 : i32
    return %c0_i32, %c0_i32_0 : i32, i32
  }
  func.func @transform_5(%arg0: i32) -> (i32, i32) {
    %c0_i32 = arith.constant 0 : i32
    %c0_i32_0 = arith.constant 0 : i32
    return %arg0, %c0_i32 : i32, i32
  }
}

</mosaic_0001>

<bundles_post_ra>
// kernel: tpu_custom_call.1
= control target key start
LH: loop header
LB: loop body
LE: loop exit
PB: predicated region body
PF: predicated region fallthrough
CT: control target
= control target key end

     0   :  { %10 = vsyncpa [#allocation3], 0  ;;  %s1072_s0 = inlined_call_operand.hbm [shape: f32[16,16], index: 0, kind: input, shape index: {}]   ;;  %s1073_s1 = inlined_call_operand.hbm [shape: f32[16,128], index: 1, kind: input, shape index: {}]   ;;  %s1074_s2 = inlined_call_operand.vmem [shape: f32[1,128], index: 2, kind: input, shape index: {}]   ;;  %s1075_s3 = inlined_call_operand.hbm [shape: f32[128,128], index: 3, kind: input, shape index: {}]   ;;  %s1076_s4 = inlined_call_operand.vmem [shape: f32[1,128], index: 4, kind: input, shape index: {}]   ;;  %s1077_s5 = inlined_call_operand.hbm [shape: f32[16,128], index: 5, kind: output, shape index: {}]  }
   0x1   :  { %12 = vsyncpa [#allocation3 + $0x1], 0 }
   0x2   :  { %13 = vsyncpa [#allocation6], 0 }
   0x3   :  { %14 = vsyncpa [#allocation4], 0 }
   0x4   :  { %16 = vsyncpa [#allocation4 + $0x1], 0  ;;  %s891_s18 = smov 0   ;;  %s893_s19 = smov 0  }
   0x5   :  { %s895_s20 = smov 0   ;;  %s897_s21 = smov 0  }
   0x6 LB: > { %s912_s22 = sadd.s32 4294967295, %s851_s21   ;;  %s551_s23 = sadd.s32 4294967294, %s851_s21   ;;  %s851_s21 = sphi %s897_s21, %s1099_s21   ;;  %s847_s20 = sphi %s895_s20, %s1098_s20   ;;  %s843_s19 = sphi %s893_s19, %s1097_s19   ;;  %s839_s18 = sphi %s891_s18, %s1096_s18  }
   0x7   : > { %p42_p0 = scmp.ne.s32.totalorder %s843_s19, %s839_s18  ;;  %p1078_p1 = scmp.eq.s32.totalorder %s912_s22, 0 }
   0x8   : > { %p156_p3 = scmp.eq.s32.totalorder %s551_s23, 1  ;;  %p552_p5 = scmp.ge.s32.totalorder %s851_s21, 1 }
   0x9   : > { %p921_p4 = por %p1078_p1, %p42_p0  ;;  %p163_p7 = scmp.lt.s32.totalorder %s851_s21, 3 }
   0xa   : > { %p926_p6 = por %p156_p3, %p42_p0  ;;  %s853_s27 = smov [#allocation5]  }
   0xb   : > { %s1082_s24 = scalar_select %p921_p4, 1, 0 }
   0xc   : > { %s1083_s25 = scalar_select %p926_p6, 1, 0 }
   0xd   : > { %p931_p8 = pnand %p552_p5, %p163_p7  ;;  %s175_s28 = sshll.u32 %s853_s27, 4  ;;  %s176_s28 = int_to_ptr.vmem [resolvable:$true] %s175_s28 }
   0xe   : > { %s854_s30 = smov [#allocation7]   ;;  %s714_s7 = scalar_lea.vmem %s176_s28, 256 }
   0xf   : > { %s1084_s26 = scalar_select %p931_p8, 1, 0 }
  0x10   : > { %p644_p9 = pneg %p931_p8  ;;  %s191_s6 = sshll.u32 %s854_s30, 4  ;;  %s192_s6 = int_to_ptr.vmem [resolvable:$true] %s191_s6 }
  0x11   : > { %p715_p13 = scmp.ne.s32.totalorder %s176_s28, %s714_s7  ;;  %p722_p5 = scmp.lt.s32.totalorder %s176_s28, %s176_s28 }
  0x12   : > { %p940_p11 = pnand %p644_p9, %p1078_p1  ;;  %p723_p7 = scmp.lt.s32.totalorder %s714_s7, %s714_s7 }
  0x14   : > { %p705_p12 = pneg %p940_p11  ;;  %p724_p10 = por %p723_p7, %p722_p5 }
  0x16   : > { %p717_p0 = pnand %p715_p13, %p705_p12 }
  0x18   : > { %p718_p3 = pneg %p717_p0 }
  0x1a   : > { %p725_p9 = pnand %p724_p10, %p718_p3 }
  0x1c   : > { %728 = shalt.err (!%p725_p9)
}
  0x1d   : > { %s855_s8 = smov 128   ;;  %s856_s9 = smov 8  }
  0x1e   : > { %647 = dma.hbm_to_vmem [thread:$0]  (!%p940_p11), %s1073_s1, 256, %s176_s28, [#allocation6], %s855_s8, %s855_s8, %s856_s9  }
  0x1f   : > { %s740_s12 = scalar_lea.vmem %s192_s6, 2048  ;;  %p748_p2 = scmp.lt.s32.totalorder %s192_s6, %s192_s6 }
  0x20   : > { %p741_p1 = scmp.ne.s32.totalorder %s192_s6, %s740_s12  ;;  %p749_p6 = scmp.lt.s32.totalorder %s740_s12, %s740_s12 }
  0x22   : > { %p743_p13 = pnand %p741_p1, %p705_p12  ;;  %p750_p5 = por %p749_p6, %p748_p2 }
  0x24   : > { %p744_p0 = pneg %p743_p13 }
  0x26   : > { %p751_p10 = pnand %p750_p5, %p744_p0 }
  0x28   : > { %754 = shalt.err (!%p751_p10)
}
  0x29   : > { %650 = dma.hbm_to_vmem [thread:$0]  (!%p940_p11), %s1075_s3, 2048, %s192_s6, [#allocation6], %s855_s8, %s855_s8, %s856_s9  }
  0x2a   : > { %s963_s15 = sadd.s32 1, %s851_s21   ;;  %s29_s16 = sadd.s32 1, %s847_s20 }
  0x2b   : > { %s26_s17 = ssub.s32 %s851_s21, %s963_s15  ;;  %p36_p1 = scmp.ne.s32.totalorder %s847_s20, %s843_s19 }
  0x2c   : > { %p27_p2 = scmp.eq.s32.totalorder %s26_s17, 0  ;;  %p37_p6 = scmp.eq.s32.totalorder %s851_s21, 0 }
  0x2d   : > { %p1086_p12 = scmp.eq.s32.totalorder %s912_s22, 1  ;;  %p661_p7 = scmp.lt.s32.totalorder %s851_s21, 2 }
  0x2e   : > { %s979_s27 = scalar_select %p27_p2, %s847_s20, %s29_s16  }
  0x2f   : > { %p973_p3 = por %p1086_p12, %p36_p1  ;;  %p38_p9 = por %p37_p6, %p36_p1 }
  0x30   : > { %s208_s28 = sand.u32 1, %s847_s20   ;;  %s557_s30 = sshll.u32 %s851_s21, 7 }
  0x31   : > { %s1087_s23 = scalar_select %p973_p3, 1, 0 }
  0x32   : > { %s556_s29 = sshll.u32 %s208_s28, 3  ;;  %s986_s8 = scalar_lea.hbm %s1072_s0, %s557_s30 }
  0x33   : > { %s212_s9 = scalar_lea.vmem [#allocation2], %s556_s29  ;;  %p988_p11 = pnand %p661_p7, %p38_p9 }
  0x34   : > { %s219_s10 = sshll.u32 %s212_s9, 4  ;;  %s209_s12 = scalar_lea.sflag [#allocation3], %s208_s28  ;;  %s220_s10 = int_to_ptr.vmem [resolvable:$true] %s219_s10 }
  0x35   : > { %s755_s13 = scalar_lea.hbm %s986_s8, 128  ;;  %p757_p0 = pneg %p988_p11 }
  0x36   : > { %p756_p13 = scmp.ne.s32.totalorder %s986_s8, %s755_s13  ;;  %s760_s17 = scalar_lea.hbm %s1072_s0, 256 }
  0x37   : > { %p761_p1 = scmp.lt.s32.totalorder %s986_s8, %s1072_s0  ;;  %p762_p2 = scmp.lt.s32.totalorder %s760_s17, %s755_s13 }
  0x38   : > { %p758_p5 = pnand %p757_p0, %p756_p13 }
  0x39   : > { %p763_p6 = por %p762_p2, %p761_p1 }
  0x3a   : > { %p759_p10 = pneg %p758_p5 }
  0x3c   : > { %p764_p12 = pnand %p763_p6, %p759_p10 }
  0x3e   : > { %767 = shalt.err (!%p764_p12)
}
  0x3f   : > { %s768_s6 = scalar_lea.vmem %s220_s10, 128  ;;  %s857_s28 = smov [#allocation2]  }
  0x40   : > { %p769_p7 = scmp.ne.s32.totalorder %s220_s10, %s768_s6  ;;  %s773_s7 = sshll.u32 %s857_s28, 4  ;;  %s774_s7 = int_to_ptr.vmem [resolvable:$false] %s773_s7 }
  0x41   : > { %s775_s9 = scalar_lea.vmem %s774_s7, 256  ;;  %p776_p13 = scmp.lt.s32.totalorder %s220_s10, %s774_s7 }
  0x42   : > { %p771_p9 = pnand %p769_p7, %p757_p0  ;;  %p777_p5 = scmp.lt.s32.totalorder %s775_s9, %s768_s6 }
  0x44   : > { %p772_p3 = pneg %p771_p9  ;;  %p778_p4 = por %p777_p5, %p776_p13 }
  0x46   : > { %p779_p8 = pnand %p778_p4, %p772_p3 }
  0x48   : > { %782 = shalt.err (!%p779_p8)
}
  0x49   : > { %654 = dma.hbm_to_vmem [thread:$0]  (!%p988_p11), %s986_s8, 128, %s220_s10, %s209_s12  }
  0x4a   : > { %p1089_p10 = scmp.ne.s32.totalorder %s1084_s26, 0 }
  0x4b   : > { %s1009_s13 = sand.u32 (!%p1089_p10), 1, %s843_s19   ;;  %p1090_p4 = scmp.ne.s32.totalorder (!%p1089_p10), %s1082_s24, 0 }
  0x4c   : > { %228 = sbr.rel (%p1089_p10) target bundleno = 496 (0x1f0), region = 40  ;;  %s559_s14 = sshll.u32 (!%p1089_p10), %s1009_s13, 3 }
  0x4d   : > { %s231_s16 = scalar_lea.sflag (!%p1089_p10), [#allocation3], %s1009_s13  ;;  %s234_s17 = scalar_lea.vmem (!%p1089_p10), [#allocation2], %s559_s14 }
  0x51   : > { %826 = dma.done.wait (%p1090_p4), %s231_s16, 128  }
  0x52   : > { %828 = vsyncadd (%p1090_p4), %s231_s16, 4294967168  ;;  %p1091_p8 = scmp.eq.s32.totalorder %s912_s22, 0 }
  0x54   : > { %830 = dma.done.wait (%p1091_p8), [#allocation6], 2304   ;;  %p1092_p3 = pmov %p1091_p8 }
  0x55   : > { %v858_v0 = vmov 0.0   ;;  %vm859_vm0 = vmmov 0   ;;  %v271_v1 = vld [vmem:[#allocation5 + $0x8] sm:$0xff]  ;;  %v270_v2 = vld [vmem:[#allocation5] sm:$0xff]  ;;  %v269_v3 = vld [vmem:[%s234_s17] sm:$0xff]  ;;  %vm280_vm1 = vcmask 130048  }
  0x56   : > { %832 = vsyncadd (%p1092_p3), [#allocation6], 4294964992  ;;  %590 = vmatprep.subr.mxu0 %v858_v0  ;;  %594 = vmatprep.mubr.msk.f32.mxu0 %vm859_vm0, %v858_v0  ;;  %v370_v4 = vld [vmem:[#allocation7 + $0x78] sm:$0xff]  ;;  %v369_v5 = vld [vmem:[#allocation7 + $0x70] sm:$0xff]  ;;  %s567_s11 = sshll.u32 %s912_s22, 7  ;;  %s268_s12 = scalar_lea.vmem [#allocation8], %s559_s14 }
  0x57   : > { %597 = vmatprep.subr.mxu1 %v858_v0  ;;  %629 = vmatprep.mubr.msk.f32.mxu1 %vm859_vm0, %v858_v0  ;;  %v368_v6 = vld [vmem:[#allocation7 + $0x68] sm:$0xff]  ;;  %v367_v7 = vld [vmem:[#allocation7 + $0x60] sm:$0xff]  ;;  %v366_v8 = vld [vmem:[#allocation7 + $0x58] sm:$0xff]  ;;  %s462_s30 = sshll.u32 %s268_s12, 4  ;;  %s1035_s28 = scalar_lea.hbm %s1077_s5, %s567_s11  ;;  %s463_s30 = int_to_ptr.vmem [resolvable:$true] %s462_s30 }
  0x58   : > { %591 = vmatpush3.msra.mxu0 %v271_v1  ;;  %598 = vmatpush3.msra.mxu1 %v370_v4  ;;  %v365_v9 = vld [vmem:[#allocation7 + $0x50] sm:$0xff]  ;;  %v364_v10 = vld [vmem:[#allocation7 + $0x48] sm:$0xff]  ;;  %v363_v11 = vld [vmem:[#allocation7 + $0x40] sm:$0xff]  ;;  %s449_s7 = scalar_lea.sflag [#allocation4], %s1009_s13  ;;  %s783_s9 = scalar_lea.vmem %s463_s30, 128 }
  0x59   : > { %592 = vmatprep.subr.mxu0 %v858_v0  ;;  %599 = vmatprep.subr.mxu1 %v858_v0  ;;  %v362_v12 = vld [vmem:[#allocation7 + $0x38] sm:$0xff]  ;;  %v361_v13 = vld [vmem:[#allocation7 + $0x30] sm:$0xff]  ;;  %v360_v14 = vld [vmem:[#allocation7 + $0x28] sm:$0xff]  ;;  %p784_p11 = scmp.ne.s32.totalorder %s463_s30, %s783_s9  ;;  %p1093_p0 = scmp.ne.s32.totalorder %s1087_s23, 0 }
  0x5a   : > { %593 = vmatpush3.msra.mxu0 %v270_v2  ;;  %600 = vmatpush3.msra.mxu1 %v369_v5  ;;  %v359_v15 = vld [vmem:[#allocation7 + $0x20] sm:$0xff]  ;;  %v358_v16 = vld [vmem:[#allocation7 + $0x18] sm:$0xff]  ;;  %v357_v17 = vld [vmem:[#allocation7 + $0x10] sm:$0xff]  ;;  %s860_s22 = smov [#allocation8]  }
  0x5b   : > { %595 = vmatmul.mubr.msk.f32.vlgmr.msra.gmra.mxu0 %vm280_vm1, %v269_v3  ;;  %601 = vmatprep.subr.mxu1 %v858_v0  ;;  %v356_v18 = vld [vmem:[#allocation7 + $0x8] sm:$0xff]  ;;  %v355_v19 = vld [vmem:[#allocation7] sm:$0xff]  ;;  %p785_p1 = pnand %p784_p11, %p1093_p0  ;;  %s787_s16 = sshll.u32 %s860_s22, 4  ;;  %s788_s16 = int_to_ptr.vmem [resolvable:$false] %s787_s16 }
  0x5c   : > { %602 = vmatpush3.msra.mxu1 %v368_v6  ;;  %v563_v20 = vld [vmem:[%s1074_s2] ss:$0 sm:$0xff]  ;;  %s789_s14 = scalar_lea.vmem %s788_s16, 256  ;;  %p790_p6 = scmp.lt.s32.totalorder %s463_s30, %s788_s16 }
  0x5d   : > { %603 = vmatprep.subr.mxu1 %v858_v0  ;;  %v565_v25 = vld [vmem:[%s1076_s4] ss:$0 sm:$0xff]  ;;  %p786_p2 = pneg %p785_p1  ;;  %p791_p12 = scmp.lt.s32.totalorder %s789_s14, %s783_s9 }
  0x5e   : > { %604 = vmatpush3.msra.mxu1 %v367_v7 }
  0x5f   : > { %605 = vmatprep.subr.mxu1 %v858_v0  ;;  %p792_p7 = por %p791_p12, %p790_p6 }
  0x60   : > { %606 = vmatpush3.msra.mxu1 %v366_v8 }
  0x61   : > { %607 = vmatprep.subr.mxu1 %v858_v0  ;;  %p793_p9 = pnand %p792_p7, %p786_p2 }
  0x62   : > { %608 = vmatpush3.msra.mxu1 %v365_v9 }
  0x63   : > { %609 = vmatprep.subr.mxu1 %v858_v0 }
  0x64   : > { %610 = vmatpush3.msra.mxu1 %v364_v10 }
  0x65   : > { %611 = vmatprep.subr.mxu1 %v858_v0 }
  0x66   : > { %612 = vmatpush3.msra.mxu1 %v363_v11 }
  0x67   : > { %613 = vmatprep.subr.mxu1 %v858_v0 }
  0x68   : > { %614 = vmatpush3.msra.mxu1 %v362_v12 }
  0x69   : > { %615 = vmatprep.subr.mxu1 %v858_v0 }
  0x6a   : > { %616 = vmatpush3.msra.mxu1 %v361_v13 }
  0x6b   : > { %617 = vmatprep.subr.mxu1 %v858_v0 }
  0x6c   : > { %618 = vmatpush3.msra.mxu1 %v360_v14 }
  0x6d   : > { %619 = vmatprep.subr.mxu1 %v858_v0 }
  0x6e   : > { %620 = vmatpush3.msra.mxu1 %v359_v15 }
  0x6f   : > { %621 = vmatprep.subr.mxu1 %v858_v0 }
  0x70   : > { %622 = vmatpush3.msra.mxu1 %v358_v16 }
  0x71   : > { %623 = vmatprep.subr.mxu1 %v858_v0 }
  0x72   : > { %624 = vmatpush3.msra.mxu1 %v357_v17 }
  0x73   : > { %625 = vmatprep.subr.mxu1 %v858_v0 }
  0x74   : > { %626 = vmatpush3.msra.mxu1 %v356_v18 }
  0x75   : > { %627 = vmatprep.subr.mxu1 %v858_v0 }
  0x76   : > { %628 = vmatpush3.msra.mxu1 %v355_v19 }
 0x11b   : > { %v350_v21 = vpop.f32.mrf.mxu0 }
 0x11c   : > { %v351_v22 = vadd.f32 %v563_v20, %v350_v21 }
 0x11d   : > { %v596_v23 = vpop.f32.mrf.mxu0 }
 0x11e   : > { %v354_v24 = vmax.f32 %v351_v22, 0.0 }
 0x120   : > { %630 = vmatmul.mubr.f32.vlgmr.msra.gmra.mxu1 %v354_v24 }
 0x1e0   : > { %v443_v26 = vpop.f32.mrf.mxu1 }
 0x1e1   : > { %v444_v27 = vadd.f32 %v565_v25, %v443_v26 }
 0x1e2   : > { %v631_v28 = vpop.f32.mrf.mxu1 }
 0x1e3   : > { %447 = vst [vmem:[%s268_s12] sm:$0xff] %v444_v27 }
 0x1e4   : > { %796 = shalt.err (!%p793_p9)
}
 0x1e5   : > { %s797_s17 = scalar_lea.hbm %s1035_s28, 128  ;;  %s801_s26 = scalar_lea.hbm %s1077_s5, 256 }
 0x1e6   : > { %p798_p13 = scmp.ne.s32.totalorder %s1035_s28, %s797_s17  ;;  %p802_p4 = scmp.lt.s32.totalorder %s1035_s28, %s1077_s5 }
 0x1e7   : > { %p803_p8 = scmp.lt.s32.totalorder %s801_s26, %s797_s17 }
 0x1e8   : > { %p799_p5 = pnand %p798_p13, %p1093_p0 }
 0x1e9   : > { %p804_p3 = por %p803_p8, %p802_p4 }
 0x1ea   : > { %p800_p10 = pneg %p799_p5 }
 0x1ec   : > { %p805_p11 = pnand %p804_p3, %p800_p10 }
 0x1ee   : > { %808 = shalt.err (!%p805_p11)
}
 0x1ef   : > { %642 = dma.vmem_to_hbm [thread:$0]  (%p1093_p0), %s463_s30, 128, %s1035_s28, %s449_s7  }
 0x1f0 PF: > { %s474_s11 = sand.u32 1, %s839_s18   ;;  %p1094_p1 = scmp.ne.s32.totalorder %s1083_s25, 0 }
 0x1f1   : > { %p1095_p2 = scmp.ge.s32.totalorder %s851_s21, 2  ;;  %s475_s12 = scalar_lea.sflag [#allocation4], %s474_s11 }
 0x1f3   : > { %p656_p6 = pnand %p1095_p2, %p1094_p1 }
 0x1f5   : > { %p657_p12 = pneg %p656_p6 }
 0x1f7   : > { %834 = dma.done.wait (%p657_p12), %s475_s12, 128  }
 0x1f8   : > { %836 = vsyncadd (%p657_p12), %s475_s12, 4294967168  ;;  %p19_p7 = scmp.ge.s32.totalorder %s963_s15, 4   ;;  %s1096_s18 = smov %s843_s19 }
 0x1f9   : > { %s1097_s19 = smov %s847_s20  ;;  %s1098_s20 = smov %s979_s27 }
 0x1fa   : > { %s1099_s21 = smov %s963_s15  ;;  %21 = sbr.rel (!%p19_p7) target bundleno = 6 (0x6), region = 93 }
 0x1ff   :  { %480 = vsyncpa [#allocation3], 1 }
 0x200   :  { %482 = vsyncpa [#allocation3 + $0x1], 1 }
 0x201   :  { %483 = vsyncpa [#allocation6], 1 }
 0x202   :  { %484 = vsyncpa [#allocation4], 1 }
 0x203   :  { %486 = vsyncpa [#allocation4 + $0x1], 1 }

// kernel: tpu_custom_call.1
= control target key start
LH: loop header
LB: loop body
LE: loop exit
PB: predicated region body
PF: predicated region fallthrough
CT: control target
= control target key end

     0   :  { %10 = vsyncpa [#allocation3], 0  ;;  %s1072_s0 = inlined_call_operand.hbm [shape: f32[16,16], index: 0, kind: input, shape index: {}]   ;;  %s1073_s1 = inlined_call_operand.hbm [shape: f32[16,128], index: 1, kind: input, shape index: {}]   ;;  %s1074_s2 = inlined_call_operand.vmem [shape: f32[1,128], index: 2, kind: input, shape index: {}]   ;;  %s1075_s3 = inlined_call_operand.hbm [shape: f32[128,128], index: 3, kind: input, shape index: {}]   ;;  %s1076_s4 = inlined_call_operand.vmem [shape: f32[1,128], index: 4, kind: input, shape index: {}]   ;;  %s1077_s5 = inlined_call_operand.hbm [shape: f32[16,128], index: 5, kind: output, shape index: {}]  }
   0x1   :  { %12 = vsyncpa [#allocation3 + $0x1], 0 }
   0x2   :  { %13 = vsyncpa [#allocation6], 0 }
   0x3   :  { %14 = vsyncpa [#allocation4], 0 }
   0x4   :  { %16 = vsyncpa [#allocation4 + $0x1], 0  ;;  %s891_s18 = smov 0   ;;  %s893_s19 = smov 0  }
   0x5   :  { %s895_s20 = smov 0   ;;  %s897_s21 = smov 0  }
   0x6 LB: > { %s912_s22 = sadd.s32 4294967295, %s851_s21   ;;  %s551_s23 = sadd.s32 4294967294, %s851_s21   ;;  %s851_s21 = sphi %s897_s21, %s1099_s21   ;;  %s847_s20 = sphi %s895_s20, %s1098_s20   ;;  %s843_s19 = sphi %s893_s19, %s1097_s19   ;;  %s839_s18 = sphi %s891_s18, %s1096_s18  }
   0x7   : > { %p42_p0 = scmp.ne.s32.totalorder %s843_s19, %s839_s18  ;;  %p1078_p1 = scmp.eq.s32.totalorder %s912_s22, 0 }
   0x8   : > { %p156_p3 = scmp.eq.s32.totalorder %s551_s23, 1  ;;  %p552_p5 = scmp.ge.s32.totalorder %s851_s21, 1 }
   0x9   : > { %p921_p4 = por %p1078_p1, %p42_p0  ;;  %p163_p7 = scmp.lt.s32.totalorder %s851_s21, 3 }
   0xa   : > { %p926_p6 = por %p156_p3, %p42_p0  ;;  %s853_s27 = smov [#allocation5]  }
   0xb   : > { %s1082_s24 = scalar_select %p921_p4, 1, 0 }
   0xc   : > { %s1083_s25 = scalar_select %p926_p6, 1, 0 }
   0xd   : > { %p931_p8 = pnand %p552_p5, %p163_p7  ;;  %s175_s28 = sshll.u32 %s853_s27, 4  ;;  %s176_s28 = int_to_ptr.vmem [resolvable:$true] %s175_s28 }
   0xe   : > { %s854_s30 = smov [#allocation7]   ;;  %s714_s7 = scalar_lea.vmem %s176_s28, 256 }
   0xf   : > { %s1084_s26 = scalar_select %p931_p8, 1, 0 }
  0x10   : > { %p644_p9 = pneg %p931_p8  ;;  %s191_s6 = sshll.u32 %s854_s30, 4  ;;  %s192_s6 = int_to_ptr.vmem [resolvable:$true] %s191_s6 }
  0x11   : > { %p715_p13 = scmp.ne.s32.totalorder %s176_s28, %s714_s7  ;;  %p722_p5 = scmp.lt.s32.totalorder %s176_s28, %s176_s28 }
  0x12   : > { %p940_p11 = pnand %p644_p9, %p1078_p1  ;;  %p723_p7 = scmp.lt.s32.totalorder %s714_s7, %s714_s7 }
  0x14   : > { %p705_p12 = pneg %p940_p11  ;;  %p724_p10 = por %p723_p7, %p722_p5 }
  0x16   : > { %p717_p0 = pnand %p715_p13, %p705_p12 }
  0x18   : > { %p718_p3 = pneg %p717_p0 }
  0x1a   : > { %p725_p9 = pnand %p724_p10, %p718_p3 }
  0x1c   : > { %728 = shalt.err (!%p725_p9)
}
  0x1d   : > { %s855_s8 = smov 128   ;;  %s856_s9 = smov 8  }
  0x1e   : > { %647 = dma.hbm_to_vmem [thread:$0]  (!%p940_p11), %s1073_s1, 256, %s176_s28, [#allocation6], %s855_s8, %s855_s8, %s856_s9  }
  0x1f   : > { %s740_s12 = scalar_lea.vmem %s192_s6, 2048  ;;  %p748_p2 = scmp.lt.s32.totalorder %s192_s6, %s192_s6 }
  0x20   : > { %p741_p1 = scmp.ne.s32.totalorder %s192_s6, %s740_s12  ;;  %p749_p6 = scmp.lt.s32.totalorder %s740_s12, %s740_s12 }
  0x22   : > { %p743_p13 = pnand %p741_p1, %p705_p12  ;;  %p750_p5 = por %p749_p6, %p748_p2 }
  0x24   : > { %p744_p0 = pneg %p743_p13 }
  0x26   : > { %p751_p10 = pnand %p750_p5, %p744_p0 }
  0x28   : > { %754 = shalt.err (!%p751_p10)
}
  0x29   : > { %650 = dma.hbm_to_vmem [thread:$0]  (!%p940_p11), %s1075_s3, 2048, %s192_s6, [#allocation6], %s855_s8, %s855_s8, %s856_s9  }
  0x2a   : > { %s963_s15 = sadd.s32 1, %s851_s21   ;;  %s29_s16 = sadd.s32 1, %s847_s20 }
  0x2b   : > { %s26_s17 = ssub.s32 %s851_s21, %s963_s15  ;;  %p36_p1 = scmp.ne.s32.totalorder %s847_s20, %s843_s19 }
  0x2c   : > { %p27_p2 = scmp.eq.s32.totalorder %s26_s17, 0  ;;  %p37_p6 = scmp.eq.s32.totalorder %s851_s21, 0 }
  0x2d   : > { %p1086_p12 = scmp.eq.s32.totalorder %s912_s22, 1  ;;  %p661_p7 = scmp.lt.s32.totalorder %s851_s21, 2 }
  0x2e   : > { %s979_s27 = scalar_select %p27_p2, %s847_s20, %s29_s16  }
  0x2f   : > { %p973_p3 = por %p1086_p12, %p36_p1  ;;  %p38_p9 = por %p37_p6, %p36_p1 }
  0x30   : > { %s208_s28 = sand.u32 1, %s847_s20   ;;  %s557_s30 = sshll.u32 %s851_s21, 7 }
  0x31   : > { %s1087_s23 = scalar_select %p973_p3, 1, 0 }
  0x32   : > { %s556_s29 = sshll.u32 %s208_s28, 3  ;;  %s986_s8 = scalar_lea.hbm %s1072_s0, %s557_s30 }
  0x33   : > { %s212_s9 = scalar_lea.vmem [#allocation2], %s556_s29  ;;  %p988_p11 = pnand %p661_p7, %p38_p9 }
  0x34   : > { %s219_s10 = sshll.u32 %s212_s9, 4  ;;  %s209_s12 = scalar_lea.sflag [#allocation3], %s208_s28  ;;  %s220_s10 = int_to_ptr.vmem [resolvable:$true] %s219_s10 }
  0x35   : > { %s755_s13 = scalar_lea.hbm %s986_s8, 128  ;;  %p757_p0 = pneg %p988_p11 }
  0x36   : > { %p756_p13 = scmp.ne.s32.totalorder %s986_s8, %s755_s13  ;;  %s760_s17 = scalar_lea.hbm %s1072_s0, 256 }
  0x37   : > { %p761_p1 = scmp.lt.s32.totalorder %s986_s8, %s1072_s0  ;;  %p762_p2 = scmp.lt.s32.totalorder %s760_s17, %s755_s13 }
  0x38   : > { %p758_p5 = pnand %p757_p0, %p756_p13 }
  0x39   : > { %p763_p6 = por %p762_p2, %p761_p1 }
  0x3a   : > { %p759_p10 = pneg %p758_p5 }
  0x3c   : > { %p764_p12 = pnand %p763_p6, %p759_p10 }
  0x3e   : > { %767 = shalt.err (!%p764_p12)
}
  0x3f   : > { %s768_s6 = scalar_lea.vmem %s220_s10, 128  ;;  %s857_s28 = smov [#allocation2]  }
  0x40   : > { %p769_p7 = scmp.ne.s32.totalorder %s220_s10, %s768_s6  ;;  %s773_s7 = sshll.u32 %s857_s28, 4  ;;  %s774_s7 = int_to_ptr.vmem [resolvable:$false] %s773_s7 }
  0x41   : > { %s775_s9 = scalar_lea.vmem %s774_s7, 256  ;;  %p776_p13 = scmp.lt.s32.totalorder %s220_s10, %s774_s7 }
  0x42   : > { %p771_p9 = pnand %p769_p7, %p757_p0  ;;  %p777_p5 = scmp.lt.s32.totalorder %s775_s9, %s768_s6 }
  0x44   : > { %p772_p3 = pneg %p771_p9  ;;  %p778_p4 = por %p777_p5, %p776_p13 }
  0x46   : > { %p779_p8 = pnand %p778_p4, %p772_p3 }
  0x48   : > { %782 = shalt.err (!%p779_p8)
}
  0x49   : > { %654 = dma.hbm_to_vmem [thread:$0]  (!%p988_p11), %s986_s8, 128, %s220_s10, %s209_s12  }
  0x4a   : > { %p1089_p10 = scmp.ne.s32.totalorder %s1084_s26, 0 }
  0x4b   : > { %s1009_s13 = sand.u32 (!%p1089_p10), 1, %s843_s19   ;;  %p1090_p4 = scmp.ne.s32.totalorder (!%p1089_p10), %s1082_s24, 0 }
  0x4c   : > { %228 = sbr.rel (%p1089_p10) target bundleno = 496 (0x1f0), region = 40  ;;  %s559_s14 = sshll.u32 (!%p1089_p10), %s1009_s13, 3 }
  0x4d   : > { %s231_s16 = scalar_lea.sflag (!%p1089_p10), [#allocation3], %s1009_s13  ;;  %s234_s17 = scalar_lea.vmem (!%p1089_p10), [#allocation2], %s559_s14 }
  0x51   : > { %826 = dma.done.wait (%p1090_p4), %s231_s16, 128  }
  0x52   : > { %828 = vsyncadd (%p1090_p4), %s231_s16, 4294967168  ;;  %p1091_p8 = scmp.eq.s32.totalorder %s912_s22, 0 }
  0x54   : > { %830 = dma.done.wait (%p1091_p8), [#allocation6], 2304   ;;  %p1092_p3 = pmov %p1091_p8 }
  0x55   : > { %v858_v0 = vmov 0.0   ;;  %vm859_vm0 = vmmov 0   ;;  %v271_v1 = vld [vmem:[#allocation5 + $0x8] sm:$0xff]  ;;  %v270_v2 = vld [vmem:[#allocation5] sm:$0xff]  ;;  %v269_v3 = vld [vmem:[%s234_s17] sm:$0xff]  ;;  %vm280_vm1 = vcmask 130048  }
  0x56   : > { %832 = vsyncadd (%p1092_p3), [#allocation6], 4294964992  ;;  %590 = vmatprep.subr.mxu0 %v858_v0  ;;  %594 = vmatprep.mubr.msk.f32.mxu0 %vm859_vm0, %v858_v0  ;;  %v370_v4 = vld [vmem:[#allocation7 + $0x78] sm:$0xff]  ;;  %v369_v5 = vld [vmem:[#allocation7 + $0x70] sm:$0xff]  ;;  %s567_s11 = sshll.u32 %s912_s22, 7  ;;  %s268_s12 = scalar_lea.vmem [#allocation8], %s559_s14 }
  0x57   : > { %597 = vmatprep.subr.mxu1 %v858_v0  ;;  %629 = vmatprep.mubr.msk.f32.mxu1 %vm859_vm0, %v858_v0  ;;  %v368_v6 = vld [vmem:[#allocation7 + $0x68] sm:$0xff]  ;;  %v367_v7 = vld [vmem:[#allocation7 + $0x60] sm:$0xff]  ;;  %v366_v8 = vld [vmem:[#allocation7 + $0x58] sm:$0xff]  ;;  %s462_s30 = sshll.u32 %s268_s12, 4  ;;  %s1035_s28 = scalar_lea.hbm %s1077_s5, %s567_s11  ;;  %s463_s30 = int_to_ptr.vmem [resolvable:$true] %s462_s30 }
  0x58   : > { %591 = vmatpush3.msra.mxu0 %v271_v1  ;;  %598 = vmatpush3.msra.mxu1 %v370_v4  ;;  %v365_v9 = vld [vmem:[#allocation7 + $0x50] sm:$0xff]  ;;  %v364_v10 = vld [vmem:[#allocation7 + $0x48] sm:$0xff]  ;;  %v363_v11 = vld [vmem:[#allocation7 + $0x40] sm:$0xff]  ;;  %s449_s7 = scalar_lea.sflag [#allocation4], %s1009_s13  ;;  %s783_s9 = scalar_lea.vmem %s463_s30, 128 }
  0x59   : > { %592 = vmatprep.subr.mxu0 %v858_v0  ;;  %599 = vmatprep.subr.mxu1 %v858_v0  ;;  %v362_v12 = vld [vmem:[#allocation7 + $0x38] sm:$0xff]  ;;  %v361_v13 = vld [vmem:[#allocation7 + $0x30] sm:$0xff]  ;;  %v360_v14 = vld [vmem:[#allocation7 + $0x28] sm:$0xff]  ;;  %p784_p11 = scmp.ne.s32.totalorder %s463_s30, %s783_s9  ;;  %p1093_p0 = scmp.ne.s32.totalorder %s1087_s23, 0 }
  0x5a   : > { %593 = vmatpush3.msra.mxu0 %v270_v2  ;;  %600 = vmatpush3.msra.mxu1 %v369_v5  ;;  %v359_v15 = vld [vmem:[#allocation7 + $0x20] sm:$0xff]  ;;  %v358_v16 = vld [vmem:[#allocation7 + $0x18] sm:$0xff]  ;;  %v357_v17 = vld [vmem:[#allocation7 + $0x10] sm:$0xff]  ;;  %s860_s22 = smov [#allocation8]  }
  0x5b   : > { %595 = vmatmul.mubr.msk.f32.vlgmr.msra.gmra.mxu0 %vm280_vm1, %v269_v3  ;;  %601 = vmatprep.subr.mxu1 %v858_v0  ;;  %v356_v18 = vld [vmem:[#allocation7 + $0x8] sm:$0xff]  ;;  %v355_v19 = vld [vmem:[#allocation7] sm:$0xff]  ;;  %p785_p1 = pnand %p784_p11, %p1093_p0  ;;  %s787_s16 = sshll.u32 %s860_s22, 4  ;;  %s788_s16 = int_to_ptr.vmem [resolvable:$false] %s787_s16 }
  0x5c   : > { %602 = vmatpush3.msra.mxu1 %v368_v6  ;;  %v563_v20 = vld [vmem:[%s1074_s2] ss:$0 sm:$0xff]  ;;  %s789_s14 = scalar_lea.vmem %s788_s16, 256  ;;  %p790_p6 = scmp.lt.s32.totalorder %s463_s30, %s788_s16 }
  0x5d   : > { %603 = vmatprep.subr.mxu1 %v858_v0  ;;  %v565_v25 = vld [vmem:[%s1076_s4] ss:$0 sm:$0xff]  ;;  %p786_p2 = pneg %p785_p1  ;;  %p791_p12 = scmp.lt.s32.totalorder %s789_s14, %s783_s9 }
  0x5e   : > { %604 = vmatpush3.msra.mxu1 %v367_v7 }
  0x5f   : > { %605 = vmatprep.subr.mxu1 %v858_v0  ;;  %p792_p7 = por %p791_p12, %p790_p6 }
  0x60   : > { %606 = vmatpush3.msra.mxu1 %v366_v8 }
  0x61   : > { %607 = vmatprep.subr.mxu1 %v858_v0  ;;  %p793_p9 = pnand %p792_p7, %p786_p2 }
  0x62   : > { %608 = vmatpush3.msra.mxu1 %v365_v9 }
  0x63   : > { %609 = vmatprep.subr.mxu1 %v858_v0 }
  0x64   : > { %610 = vmatpush3.msra.mxu1 %v364_v10 }
  0x65   : > { %611 = vmatprep.subr.mxu1 %v858_v0 }
  0x66   : > { %612 = vmatpush3.msra.mxu1 %v363_v11 }
  0x67   : > { %613 = vmatprep.subr.mxu1 %v858_v0 }
  0x68   : > { %614 = vmatpush3.msra.mxu1 %v362_v12 }
  0x69   : > { %615 = vmatprep.subr.mxu1 %v858_v0 }
  0x6a   : > { %616 = vmatpush3.msra.mxu1 %v361_v13 }
  0x6b   : > { %617 = vmatprep.subr.mxu1 %v858_v0 }
  0x6c   : > { %618 = vmatpush3.msra.mxu1 %v360_v14 }
  0x6d   : > { %619 = vmatprep.subr.mxu1 %v858_v0 }
  0x6e   : > { %620 = vmatpush3.msra.mxu1 %v359_v15 }
  0x6f   : > { %621 = vmatprep.subr.mxu1 %v858_v0 }
  0x70   : > { %622 = vmatpush3.msra.mxu1 %v358_v16 }
  0x71   : > { %623 = vmatprep.subr.mxu1 %v858_v0 }
  0x72   : > { %624 = vmatpush3.msra.mxu1 %v357_v17 }
  0x73   : > { %625 = vmatprep.subr.mxu1 %v858_v0 }
  0x74   : > { %626 = vmatpush3.msra.mxu1 %v356_v18 }
  0x75   : > { %627 = vmatprep.subr.mxu1 %v858_v0 }
  0x76   : > { %628 = vmatpush3.msra.mxu1 %v355_v19 }
 0x11b   : > { %v350_v21 = vpop.f32.mrf.mxu0 }
 0x11c   : > { %v351_v22 = vadd.f32 %v563_v20, %v350_v21 }
 0x11d   : > { %v596_v23 = vpop.f32.mrf.mxu0 }
 0x11e   : > { %v354_v24 = vmax.f32 %v351_v22, 0.0 }
 0x120   : > { %630 = vmatmul.mubr.f32.vlgmr.msra.gmra.mxu1 %v354_v24 }
 0x1e0   : > { %v443_v26 = vpop.f32.mrf.mxu1 }
 0x1e1   : > { %v444_v27 = vadd.f32 %v565_v25, %v443_v26 }
 0x1e2   : > { %v631_v28 = vpop.f32.mrf.mxu1 }
 0x1e3   : > { %447 = vst [vmem:[%s268_s12] sm:$0xff] %v444_v27 }
 0x1e4   : > { %796 = shalt.err (!%p793_p9)
}
 0x1e5   : > { %s797_s17 = scalar_lea.hbm %s1035_s28, 128  ;;  %s801_s26 = scalar_lea.hbm %s1077_s5, 256 }
 0x1e6   : > { %p798_p13 = scmp.ne.s32.totalorder %s1035_s28, %s797_s17  ;;  %p802_p4 = scmp.lt.s32.totalorder %s1035_s28, %s1077_s5 }
 0x1e7   : > { %p803_p8 = scmp.lt.s32.totalorder %s801_s26, %s797_s17 }
 0x1e8   : > { %p799_p5 = pnand %p798_p13, %p1093_p0 }
 0x1e9   : > { %p804_p3 = por %p803_p8, %p802_p4 }
 0x1ea   : > { %p800_p10 = pneg %p799_p5 }
 0x1ec   : > { %p805_p11 = pnand %p804_p3, %p800_p10 }
 0x1ee   : > { %808 = shalt.err (!%p805_p11)
}
 0x1ef   : > { %642 = dma.vmem_to_hbm [thread:$0]  (%p1093_p0), %s463_s30, 128, %s1035_s28, %s449_s7  }
 0x1f0 PF: > { %s474_s11 = sand.u32 1, %s839_s18   ;;  %p1094_p1 = scmp.ne.s32.totalorder %s1083_s25, 0 }
 0x1f1   : > { %p1095_p2 = scmp.ge.s32.totalorder %s851_s21, 2  ;;  %s475_s12 = scalar_lea.sflag [#allocation4], %s474_s11 }
 0x1f3   : > { %p656_p6 = pnand %p1095_p2, %p1094_p1 }
 0x1f5   : > { %p657_p12 = pneg %p656_p6 }
 0x1f7   : > { %834 = dma.done.wait (%p657_p12), %s475_s12, 128  }
 0x1f8   : > { %836 = vsyncadd (%p657_p12), %s475_s12, 4294967168  ;;  %p19_p7 = scmp.ge.s32.totalorder %s963_s15, 4   ;;  %s1096_s18 = smov %s843_s19 }
 0x1f9   : > { %s1097_s19 = smov %s847_s20  ;;  %s1098_s20 = smov %s979_s27 }
 0x1fa   : > { %s1099_s21 = smov %s963_s15  ;;  %21 = sbr.rel (!%p19_p7) target bundleno = 6 (0x6), region = 93 }
 0x1ff   :  { %480 = vsyncpa [#allocation3], 1 }
 0x200   :  { %482 = vsyncpa [#allocation3 + $0x1], 1 }
 0x201   :  { %483 = vsyncpa [#allocation6], 1 }
 0x202   :  { %484 = vsyncpa [#allocation4], 1 }
 0x203   :  { %486 = vsyncpa [#allocation4 + $0x1], 1 }

</bundles_post_ra>
